<compile_context>
chip_gen: v7x
topology: tpu7x:2x2x1
jax: 0.10.0
libtpu: 0.0.40
codegen_flags: <defaults>
</compile_context>

<pallas_src>
import jax
import jax.numpy as jnp
from jax.experimental import pallas as pl
from jax.experimental.pallas import tpu as pltpu

SELU_ALPHA = 1.6732632423543772
SELU_SCALE = 1.0507009873554805
LN_EPS = 1e-5


def _round_up(x, m):
    return (x + m - 1) // m * m


def _cdiv(a, b):
    return (a + b - 1) // b


def _selu(x):
    # exp clamped at 0 so the unselected branch never produces inf.
    return SELU_SCALE * jnp.where(
        x > 0, x, SELU_ALPHA * (jnp.exp(jnp.minimum(x, 0.0)) - 1.0))


def _choose_tiling(B, tb_max):
    """Pick (tile_rows, grid_steps): big tiles, even >=2-step grid when B>8."""
    if B <= 8:
        return 8, 1
    # >=2 even grid steps so a 2-TC chip (v7x) shards the batch across cores;
    # on 1-TC chips the extra step is ~0.35us of overhead, i.e. negligible.
    steps = max(2, _cdiv(B, tb_max))
    if steps % 2:
        steps += 1
    tb = _round_up(_cdiv(B, steps), 8)
    return tb, steps


def env_encoder_kernel(xu_ref, wxu_ref, wh2_ref, wh3_ref, bank_ref, out_ref):
    H = wh2_ref.shape[1]
    O = wh3_ref.shape[1]
    D = xu_ref.shape[1]
    inv_c = 1.0 / float(H + D)          # 1 / LayerNorm width

    xu = xu_ref[...]                    # (tb, D) f32

    # Packed bias / LN bank (static slices -> views, no runtime cost).
    b1 = bank_ref[0:1, 0:H]             # l1 bias
    b2p = bank_ref[1:2, 0:H]            # l2 bias + be1 @ W2 folded in
    c2 = bank_ref[2:3, 0:H]             # colsum(g1 * W2)  (mean correction)
    b3p = bank_ref[3:4, 0:O]            # l3 bias + be2 @ W3 folded in
    c3 = bank_ref[4:5, 0:O]             # colsum(g2 * W3)

    # ---- MXU pass 1: every xu-side matmul fused into one.
    # Columns: [W1 | g1x*W2x | g2x*W3x]  ->  (tb, H + H + O)
    p = jnp.dot(xu, wxu_ref[...], preferred_element_type=jnp.float32)

    # ---- l1 + SELU
    h = _selu(p[:, 0:H] + b1)

    # ---- LayerNorm 1 statistics over the virtual concat [h, xu]
    m1 = (jnp.sum(h, axis=-1, keepdims=True)
          + jnp.sum(xu, axis=-1, keepdims=True)) * inv_c
    dh = h - m1
    dx = xu - m1
    var1 = (jnp.sum(dh * dh, axis=-1, keepdims=True)
            + jnp.sum(dx * dx, axis=-1, keepdims=True)) * inv_c
    inv1 = jax.lax.rsqrt(var1 + LN_EPS)

    # ---- l2 + SELU   (gamma folded into Wh2 / W_xu, beta folded into b2p)
    # ln1(cat) @ W2 + b2 == inv1 * (h @ Wh2 + P2 - m1*c2) + b2p
    pre2 = inv1 * (jnp.dot(h, wh2_ref[...], preferred_element_type=jnp.float32)
                   + p[:, H:2 * H] - m1 * c2) + b2p      # MXU pass 2
    h2 = _selu(pre2)

    # ---- LayerNorm 2 statistics over the virtual concat [h2, xu]
    m2 = (jnp.sum(h2, axis=-1, keepdims=True)
          + jnp.sum(xu, axis=-1, keepdims=True)) * inv_c
    d2 = h2 - m2
    dx2 = xu - m2
    var2 = (jnp.sum(d2 * d2, axis=-1, keepdims=True)
            + jnp.sum(dx2 * dx2, axis=-1, keepdims=True)) * inv_c
    inv2 = jax.lax.rsqrt(var2 + LN_EPS)

    # ---- l3
    out = inv2 * (jnp.dot(h2, wh3_ref[...], preferred_element_type=jnp.float32)
                  + p[:, 2 * H:2 * H + O] - m2 * c3) + b3p   # MXU pass 3
    out_ref[...] = out.astype(out_ref.dtype)


def env_encoder_forward(xu, params, *, tb_max=2048):
    B, in_dim = xu.shape
    H = params["w1"].shape[1]
    O = params["w3"].shape[1]

    # ---- Fold LN affine params into the matmul weights / biases (tiny,
    # elementwise-only so it stays exact-ish in f32; cache in production).
    w1, w2, w3 = params["w1"], params["w2"], params["w3"]
    g1, g2 = params["g1"], params["g2"]
    be1, be2 = params["be1"], params["be2"]

    w2h, w2x = w2[:H], w2[H:]
    w3h, w3x = w3[:H], w3[H:]
    g1h, g1x = g1[:, :H], g1[:, H:]
    g2h, g2x = g2[:, :H], g2[:, H:]

    wh2 = (g1h.T * w2h).astype(jnp.float32)                       # (H, H)
    wh3 = (g2h.T * w3h).astype(jnp.float32)                       # (H, O)
    wxu = jnp.concatenate(
        [w1, g1x.T * w2x, g2x.T * w3x], axis=1).astype(jnp.float32)  # (D, 2H+O)

    # Column sums / bias folds done elementwise (no low-precision dot).
    c2 = jnp.sum(g1.T * w2, axis=0)                               # (H,)
    c3 = jnp.sum(g2.T * w3, axis=0)                               # (O,)
    b2p = params["b2"][0] + jnp.sum(be1.T * w2, axis=0)           # (H,)
    b3p = params["b3"][0] + jnp.sum(be2.T * w3, axis=0)           # (O,)

    bank_w = _round_up(max(H, O), 128)
    bank = jnp.zeros((8, bank_w), jnp.float32)
    bank = bank.at[0, :H].set(params["b1"][0])
    bank = bank.at[1, :H].set(b2p)
    bank = bank.at[2, :H].set(c2)
    bank = bank.at[3, :O].set(b3p)
    bank = bank.at[4, :O].set(c3)

    # ---- Batch tiling.
    tb, steps = _choose_tiling(B, tb_max)
    B_pad = tb * steps
    xu_p = xu if B_pad == B else jnp.pad(xu, ((0, B_pad - B), (0, 0)))

    def resident(a):  # whole array, same block every step -> stays in VMEM
        return pl.BlockSpec(a.shape, lambda i: (0, 0))

    out = pl.pallas_call(
        env_encoder_kernel,
        out_shape=jax.ShapeDtypeStruct((B_pad, O), jnp.float32),
        grid=(steps,),
        in_specs=[pl.BlockSpec((tb, in_dim), lambda i: (i, 0)),
                  resident(wxu), resident(wh2), resident(wh3), resident(bank)],
        out_specs=pl.BlockSpec((tb, O), lambda i: (i, 0)),
        compiler_params=pltpu.CompilerParams(
            dimension_semantics=("parallel",)),
    )(xu_p, wxu, wh2, wh3, bank)

    return out[:B]


def init_params(key, in_dim, out_dim, hidden_dim):
    """Deterministic synthetic init (xavier-ish weights, non-trivial LN affine
    and biases so the folded-parameter algebra is actually exercised)."""
    ks = jax.random.split(key, 10)

    def xavier(k, fan_in, fan_out):
        limit = (6.0 / (fan_in + fan_out)) ** 0.5
        # stored as [in, out] (pre-transposed vs torch's [out, in])
        return jax.random.uniform(k, (fan_in, fan_out), jnp.float32, -limit, limit)

    def vec(k, n, scale=0.1):
        return scale * jax.random.normal(k, (1, n), jnp.float32)

    cat_dim = in_dim + hidden_dim
    return {
        "w1": xavier(ks[0], in_dim, hidden_dim),
        "b1": vec(ks[3], hidden_dim),
        "w2": xavier(ks[1], cat_dim, hidden_dim),
        "b2": vec(ks[4], hidden_dim),
        "w3": xavier(ks[2], cat_dim, out_dim),
        "b3": vec(ks[5], out_dim),
        "g1": 1.0 + vec(ks[6], cat_dim),
        "be1": vec(ks[7], cat_dim),
        "g2": 1.0 + vec(ks[8], cat_dim),
        "be2": vec(ks[9], cat_dim),
    }


def _layernorm_ref(x, gamma, beta):
    mean = jnp.mean(x, axis=-1, keepdims=True)
    var = jnp.mean((x - mean) ** 2, axis=-1, keepdims=True)
    return (x - mean) * jax.lax.rsqrt(var + LN_EPS) * gamma + beta


def env_encoder_reference(xu, p):
    """Plain-JAX reference mirroring the PyTorch forward."""
    x = _selu(xu @ p["w1"] + p["b1"])
    x = jnp.concatenate([x, xu], axis=1)
    x = _layernorm_ref(x, p["g1"], p["be1"])
    x = _selu(x @ p["w2"] + p["b2"])
    x = jnp.concatenate([x, xu], axis=1)
    x = _layernorm_ref(x, p["g2"], p["be2"])
    return x @ p["w3"] + p["b3"]


if __name__ == "__main__":
    in_dim, out_dim, hidden_dim = 16, 8, 32

    key = jax.random.PRNGKey(0)
    k_x, k_p, k_x2 = jax.random.split(key, 3)
    params = init_params(k_p, in_dim, out_dim, hidden_dim)

    # Small batch (single tile, grid=(1,)).
    batch = 8
    xu = jax.random.normal(k_x, (batch, in_dim), jnp.float32)
    out = jax.block_until_ready(env_encoder_forward(xu, params))
    ref = env_encoder_reference(xu, params)
    assert out.shape == (batch, out_dim)
    assert jnp.allclose(out, ref, atol=1e-4, rtol=1e-4), "mismatch vs reference (small)"

    # Ragged batch exercising padding + the even 2-step grid (2 x 104 rows).
    batch2 = 200
    xu2 = jax.random.normal(k_x2, (batch2, in_dim), jnp.float32)
    out2 = jax.block_until_ready(env_encoder_forward(xu2, params))
    ref2 = env_encoder_reference(xu2, params)
    assert out2.shape == (batch2, out_dim)
    assert jnp.allclose(out2, ref2, atol=1e-4, rtol=1e-4), "mismatch vs reference (gridded)"

    print("KERNEL_OK")
</pallas_src>

<mosaic_0001>
module attributes {stable_mosaic.version = 11 : i64} {
  func.func @env_encoder_kernel(%arg0: i32, %arg1: memref<8x16xf32, #tpu.memory_space<vmem>>, %arg2: memref<16x72xf32, #tpu.memory_space<vmem>>, %arg3: memref<32x32xf32, #tpu.memory_space<vmem>>, %arg4: memref<32x8xf32, #tpu.memory_space<vmem>>, %arg5: memref<8x128xf32, #tpu.memory_space<vmem>>, %arg6: memref<8x8xf32, #tpu.memory_space<vmem>>) attributes {dimension_semantics = [#tpu.dimension_semantics<parallel>], iteration_bounds = array<i64: 1>, scalar_prefetch = 0 : i64, scratch_operands = 0 : i64, tpu.core_type = #tpu.core_type<tc>, window_params = [{transform_indices = @transform_0, window_bounds = array<i64: 8, 16>}, {pipeline_mode = #tpu.pipeline_mode<synchronous>, transform_indices = @transform_1, window_bounds = array<i64: 16, 72>}, {pipeline_mode = #tpu.pipeline_mode<synchronous>, transform_indices = @transform_2, window_bounds = array<i64: 32, 32>}, {pipeline_mode = #tpu.pipeline_mode<synchronous>, transform_indices = @transform_3, window_bounds = array<i64: 32, 8>}, {pipeline_mode = #tpu.pipeline_mode<synchronous>, transform_indices = @transform_4, window_bounds = array<i64: 8, 128>}, {transform_indices = @transform_5, window_bounds = array<i64: 8, 8>}]} {
    %c0 = arith.constant 0 : index
    %c0_0 = arith.constant 0 : index
    %0 = vector.load %arg1[%c0, %c0_0] : memref<8x16xf32, #tpu.memory_space<vmem>>, vector<8x16xf32>
    %c0_1 = arith.constant 0 : index
    %c0_2 = arith.constant 0 : index
    %1 = vector.load %arg5[%c0_1, %c0_2] : memref<8x128xf32, #tpu.memory_space<vmem>>, vector<1x32xf32>
    %c1 = arith.constant 1 : index
    %c0_3 = arith.constant 0 : index
    %2 = vector.load %arg5[%c1, %c0_3] : memref<8x128xf32, #tpu.memory_space<vmem>>, vector<1x32xf32>
    %c2 = arith.constant 2 : index
    %c0_4 = arith.constant 0 : index
    %3 = vector.load %arg5[%c2, %c0_4] : memref<8x128xf32, #tpu.memory_space<vmem>>, vector<1x32xf32>
    %c3 = arith.constant 3 : index
    %c0_5 = arith.constant 0 : index
    %4 = vector.load %arg5[%c3, %c0_5] : memref<8x128xf32, #tpu.memory_space<vmem>>, vector<1x8xf32>
    %c4 = arith.constant 4 : index
    %c0_6 = arith.constant 0 : index
    %5 = vector.load %arg5[%c4, %c0_6] : memref<8x128xf32, #tpu.memory_space<vmem>>, vector<1x8xf32>
    %c0_7 = arith.constant 0 : index
    %c0_8 = arith.constant 0 : index
    %6 = vector.load %arg2[%c0_7, %c0_8] : memref<16x72xf32, #tpu.memory_space<vmem>>, vector<16x72xf32>
    %cst = arith.constant dense<0.000000e+00> : vector<8x72xf32>
    %7 = tpu.matmul %0, %6, %cst {dimension_numbers = #tpu.dot_dimension_numbers<[1], [0], [0], [1], [0, 0, 1, 1], [], []>} : vector<8x16xf32>, vector<16x72xf32>, vector<8x72xf32> -> vector<8x72xf32>
    %8 = vector.extract_strided_slice %7 {offsets = [0, 0], sizes = [8, 32], strides = [1, 1]} : vector<8x72xf32> to vector<8x32xf32>
    %9 = vector.broadcast %1 : vector<1x32xf32> to vector<8x32xf32>
    %10 = arith.addf %8, %9 : vector<8x32xf32>
    %cst_9 = arith.constant 0.000000e+00 : f32
    %11 = vector.broadcast %cst_9 : f32 to vector<8x32xf32>
    %12 = arith.cmpf ogt, %10, %11 : vector<8x32xf32>
    %cst_10 = arith.constant 0.000000e+00 : f32
    %13 = vector.broadcast %cst_10 : f32 to vector<8x32xf32>
    %14 = arith.minimumf %10, %13 : vector<8x32xf32>
    %15 = math.exp %14 : vector<8x32xf32>
    %cst_11 = arith.constant 1.000000e+00 : f32
    %16 = vector.broadcast %cst_11 : f32 to vector<8x32xf32>
    %17 = arith.subf %15, %16 : vector<8x32xf32>
    %cst_12 = arith.constant 1.67326319 : f32
    %18 = vector.broadcast %cst_12 : f32 to vector<8x32xf32>
    %19 = arith.mulf %18, %17 : vector<8x32xf32>
    %20 = arith.select %12, %10, %19 : vector<8x32xi1>, vector<8x32xf32>
    %cst_13 = arith.constant 1.05070102 : f32
    %21 = vector.broadcast %cst_13 : f32 to vector<8x32xf32>
    %22 = arith.mulf %21, %20 : vector<8x32xf32>
    %cst_14 = arith.constant dense<0.000000e+00> : vector<8xf32>
    %23 = vector.multi_reduction <add>, %22, %cst_14 [1] : vector<8x32xf32> to vector<8xf32>
    %24 = vector.shape_cast %23 : vector<8xf32> to vector<8x1xf32>
    %cst_15 = arith.constant dense<0.000000e+00> : vector<8xf32>
    %25 = vector.multi_reduction <add>, %0, %cst_15 [1] : vector<8x16xf32> to vector<8xf32>
    %26 = vector.shape_cast %25 : vector<8xf32> to vector<8x1xf32>
    %27 = arith.addf %24, %26 : vector<8x1xf32>
    %cst_16 = arith.constant 0.020833334 : f32
    %28 = vector.broadcast %cst_16 : f32 to vector<8x1xf32>
    %29 = arith.mulf %27, %28 : vector<8x1xf32>
    %30 = vector.broadcast %29 : vector<8x1xf32> to vector<8x32xf32>
    %31 = arith.subf %22, %30 : vector<8x32xf32>
    %32 = vector.broadcast %29 : vector<8x1xf32> to vector<8x16xf32>
    %33 = arith.subf %0, %32 : vector<8x16xf32>
    %34 = arith.mulf %31, %31 : vector<8x32xf32>
    %cst_17 = arith.constant dense<0.000000e+00> : vector<8xf32>
    %35 = vector.multi_reduction <add>, %34, %cst_17 [1] : vector<8x32xf32> to vector<8xf32>
    %36 = vector.shape_cast %35 : vector<8xf32> to vector<8x1xf32>
    %37 = arith.mulf %33, %33 : vector<8x16xf32>
    %cst_18 = arith.constant dense<0.000000e+00> : vector<8xf32>
    %38 = vector.multi_reduction <add>, %37, %cst_18 [1] : vector<8x16xf32> to vector<8xf32>
    %39 = vector.shape_cast %38 : vector<8xf32> to vector<8x1xf32>
    %40 = arith.addf %36, %39 : vector<8x1xf32>
    %cst_19 = arith.constant 0.020833334 : f32
    %41 = vector.broadcast %cst_19 : f32 to vector<8x1xf32>
    %42 = arith.mulf %40, %41 : vector<8x1xf32>
    %cst_20 = arith.constant 9.99999974E-6 : f32
    %43 = vector.broadcast %cst_20 : f32 to vector<8x1xf32>
    %44 = arith.addf %42, %43 : vector<8x1xf32>
    %45 = math.rsqrt %44 : vector<8x1xf32>
    %c0_21 = arith.constant 0 : index
    %c0_22 = arith.constant 0 : index
    %46 = vector.load %arg3[%c0_21, %c0_22] : memref<32x32xf32, #tpu.memory_space<vmem>>, vector<32x32xf32>
    %cst_23 = arith.constant dense<0.000000e+00> : vector<8x32xf32>
    %47 = tpu.matmul %22, %46, %cst_23 {dimension_numbers = #tpu.dot_dimension_numbers<[1], [0], [0], [1], [0, 0, 1, 1], [], []>} : vector<8x32xf32>, vector<32x32xf32>, vector<8x32xf32> -> vector<8x32xf32>
    %48 = vector.extract_strided_slice %7 {offsets = [0, 32], sizes = [8, 32], strides = [1, 1]} : vector<8x72xf32> to vector<8x32xf32>
    %49 = arith.addf %47, %48 : vector<8x32xf32>
    %50 = vector.broadcast %29 : vector<8x1xf32> to vector<8x32xf32>
    %51 = vector.broadcast %3 : vector<1x32xf32> to vector<8x32xf32>
    %52 = arith.mulf %50, %51 : vector<8x32xf32>
    %53 = arith.subf %49, %52 : vector<8x32xf32>
    %54 = vector.broadcast %45 : vector<8x1xf32> to vector<8x32xf32>
    %55 = arith.mulf %54, %53 : vector<8x32xf32>
    %56 = vector.broadcast %2 : vector<1x32xf32> to vector<8x32xf32>
    %57 = arith.addf %55, %56 : vector<8x32xf32>
    %cst_24 = arith.constant 0.000000e+00 : f32
    %58 = vector.broadcast %cst_24 : f32 to vector<8x32xf32>
    %59 = arith.cmpf ogt, %57, %58 : vector<8x32xf32>
    %cst_25 = arith.constant 0.000000e+00 : f32
    %60 = vector.broadcast %cst_25 : f32 to vector<8x32xf32>
    %61 = arith.minimumf %57, %60 : vector<8x32xf32>
    %62 = math.exp %61 : vector<8x32xf32>
    %cst_26 = arith.constant 1.000000e+00 : f32
    %63 = vector.broadcast %cst_26 : f32 to vector<8x32xf32>
    %64 = arith.subf %62, %63 : vector<8x32xf32>
    %cst_27 = arith.constant 1.67326319 : f32
    %65 = vector.broadcast %cst_27 : f32 to vector<8x32xf32>
    %66 = arith.mulf %65, %64 : vector<8x32xf32>
    %67 = arith.select %59, %57, %66 : vector<8x32xi1>, vector<8x32xf32>
    %cst_28 = arith.constant 1.05070102 : f32
    %68 = vector.broadcast %cst_28 : f32 to vector<8x32xf32>
    %69 = arith.mulf %68, %67 : vector<8x32xf32>
    %cst_29 = arith.constant dense<0.000000e+00> : vector<8xf32>
    %70 = vector.multi_reduction <add>, %69, %cst_29 [1] : vector<8x32xf32> to vector<8xf32>
    %71 = vector.shape_cast %70 : vector<8xf32> to vector<8x1xf32>
    %cst_30 = arith.constant dense<0.000000e+00> : vector<8xf32>
    %72 = vector.multi_reduction <add>, %0, %cst_30 [1] : vector<8x16xf32> to vector<8xf32>
    %73 = vector.shape_cast %72 : vector<8xf32> to vector<8x1xf32>
    %74 = arith.addf %71, %73 : vector<8x1xf32>
    %cst_31 = arith.constant 0.020833334 : f32
    %75 = vector.broadcast %cst_31 : f32 to vector<8x1xf32>
    %76 = arith.mulf %74, %75 : vector<8x1xf32>
    %77 = vector.broadcast %76 : vector<8x1xf32> to vector<8x32xf32>
    %78 = arith.subf %69, %77 : vector<8x32xf32>
    %79 = vector.broadcast %76 : vector<8x1xf32> to vector<8x16xf32>
    %80 = arith.subf %0, %79 : vector<8x16xf32>
    %81 = arith.mulf %78, %78 : vector<8x32xf32>
    %cst_32 = arith.constant dense<0.000000e+00> : vector<8xf32>
    %82 = vector.multi_reduction <add>, %81, %cst_32 [1] : vector<8x32xf32> to vector<8xf32>
    %83 = vector.shape_cast %82 : vector<8xf32> to vector<8x1xf32>
    %84 = arith.mulf %80, %80 : vector<8x16xf32>
    %cst_33 = arith.constant dense<0.000000e+00> : vector<8xf32>
    %85 = vector.multi_reduction <add>, %84, %cst_33 [1] : vector<8x16xf32> to vector<8xf32>
    %86 = vector.shape_cast %85 : vector<8xf32> to vector<8x1xf32>
    %87 = arith.addf %83, %86 : vector<8x1xf32>
    %cst_34 = arith.constant 0.020833334 : f32
    %88 = vector.broadcast %cst_34 : f32 to vector<8x1xf32>
    %89 = arith.mulf %87, %88 : vector<8x1xf32>
    %cst_35 = arith.constant 9.99999974E-6 : f32
    %90 = vector.broadcast %cst_35 : f32 to vector<8x1xf32>
    %91 = arith.addf %89, %90 : vector<8x1xf32>
    %92 = math.rsqrt %91 : vector<8x1xf32>
    %c0_36 = arith.constant 0 : index
    %c0_37 = arith.constant 0 : index
    %93 = vector.load %arg4[%c0_36, %c0_37] : memref<32x8xf32, #tpu.memory_space<vmem>>, vector<32x8xf32>
    %cst_38 = arith.constant dense<0.000000e+00> : vector<8x8xf32>
    %94 = tpu.matmul %69, %93, %cst_38 {dimension_numbers = #tpu.dot_dimension_numbers<[1], [0], [0], [1], [0, 0, 1, 1], [], []>} : vector<8x32xf32>, vector<32x8xf32>, vector<8x8xf32> -> vector<8x8xf32>
    %95 = vector.extract_strided_slice %7 {offsets = [0, 64], sizes = [8, 8], strides = [1, 1]} : vector<8x72xf32> to vector<8x8xf32>
    %96 = arith.addf %94, %95 : vector<8x8xf32>
    %97 = vector.broadcast %76 : vector<8x1xf32> to vector<8x8xf32>
    %98 = vector.broadcast %5 : vector<1x8xf32> to vector<8x8xf32>
    %99 = arith.mulf %97, %98 : vector<8x8xf32>
    %100 = arith.subf %96, %99 : vector<8x8xf32>
    %101 = vector.broadcast %92 : vector<8x1xf32> to vector<8x8xf32>
    %102 = arith.mulf %101, %100 : vector<8x8xf32>
    %103 = vector.broadcast %4 : vector<1x8xf32> to vector<8x8xf32>
    %104 = arith.addf %102, %103 : vector<8x8xf32>
    %c0_39 = arith.constant 0 : index
    %c0_40 = arith.constant 0 : index
    %105 = vector.load %arg6[%c0_39, %c0_40] : memref<8x8xf32, #tpu.memory_space<vmem>>, vector<8x8xf32>
    tpu.vector_store %arg6[%c0_39, %c0_40], %104 {strides = array<i32>} : memref<8x8xf32, #tpu.memory_space<vmem>>, vector<8x8xf32>,
    return
  }
  func.func @transform_0(%arg0: i32) -> (i32, i32) {
    %c0_i32 = arith.constant 0 : i32
    %c0_i32_0 = arith.constant 0 : i32
    return %arg0, %c0_i32 : i32, i32
  }
  func.func @transform_1(%arg0: i32) -> (i32, i32) {
    %c0_i32 = arith.constant 0 : i32
    %c0_i32_0 = arith.constant 0 : i32
    %c0_i32_1 = arith.constant 0 : i32
    return %c0_i32, %c0_i32_0 : i32, i32
  }
  func.func @transform_2(%arg0: i32) -> (i32, i32) {
    %c0_i32 = arith.constant 0 : i32
    %c0_i32_0 = arith.constant 0 : i32
    %c0_i32_1 = arith.constant 0 : i32
    return %c0_i32, %c0_i32_0 : i32, i32
  }
  func.func @transform_3(%arg0: i32) -> (i32, i32) {
    %c0_i32 = arith.constant 0 : i32
    %c0_i32_0 = arith.constant 0 : i32
    %c0_i32_1 = arith.constant 0 : i32
    return %c0_i32, %c0_i32_0 : i32, i32
  }
  func.func @transform_4(%arg0: i32) -> (i32, i32) {
    %c0_i32 = arith.constant 0 : i32
    %c0_i32_0 = arith.constant 0 : i32
    %c0_i32_1 = arith.constant 0 : i32
    return %c0_i32, %c0_i32_0 : i32, i32
  }
  func.func @transform_5(%arg0: i32) -> (i32, i32) {
    %c0_i32 = arith.constant 0 : i32
    %c0_i32_0 = arith.constant 0 : i32
    return %arg0, %c0_i32 : i32, i32
  }
}

</mosaic_0001>

<bundles_post_ra>
// kernel: tpu_custom_call.1
= control target key start
LH: loop header
LB: loop body
LE: loop exit
PB: predicated region body
PF: predicated region fallthrough
CT: control target
= control target key end

     0   :  { %10 = vsyncpa [#allocation3], 0  ;;  %s681_s0 = inlined_call_operand.vmem [shape: f32[8,16], index: 0, kind: input, shape index: {}]   ;;  %s682_s1 = inlined_call_operand.hbm [shape: f32[16,72], index: 1, kind: input, shape index: {}]   ;;  %s683_s2 = inlined_call_operand.vmem [shape: f32[32,32], index: 2, kind: input, shape index: {}]   ;;  %s684_s3 = inlined_call_operand.vmem [shape: f32[32,8], index: 3, kind: input, shape index: {}]   ;;  %s685_s4 = inlined_call_operand.hbm [shape: f32[8,128], index: 4, kind: input, shape index: {}]   ;;  %s686_s5 = inlined_call_operand.hbm [shape: f32[8,8], index: 5, kind: output, shape index: {}]  }
   0x1   :  { %11 = vsyncpa [#allocation6], 0 }
   0x2   :  { %12 = vsyncpa [#allocation4], 0  ;;  %s552_s18 = smov [#allocation2]   ;;  %s480_s22 = scalar_lea.hbm %s682_s1, 256 }
   0x3   :  { %s20_s19 = sshll.u32 %s552_s18, 4  ;;  %p481_p0 = scmp.ne.s32.totalorder %s682_s1, %s480_s22  ;;  %s21_s19 = int_to_ptr.vmem [resolvable:$true] %s20_s19 }
   0x4   :  { %p484_p1 = scmp.lt.u32.totalorder %s480_s22, %s682_s1 }
   0x6   :  { %p486_p2 = pnand %p484_p1, %p481_p0 }
   0x8   :  { %489 = shalt.err (!%p486_p2)
}
   0x9   :  { %s490_s27 = scalar_lea.vmem %s21_s19, 256  ;;  %p495_p4 = scmp.lt.s32.totalorder %s21_s19, %s21_s19 }
   0xa   :  { %p491_p3 = scmp.ne.s32.totalorder %s21_s19, %s490_s27  ;;  %p496_p5 = scmp.lt.s32.totalorder %s490_s27, %s490_s27 }
   0xc   :  { %p497_p6 = por %p496_p5, %p495_p4 }
   0xe   :  { %p498_p7 = pnand %p497_p6, %p491_p3 }
  0x10   :  { %501 = shalt.err (!%p498_p7)
}
  0x11   :  { %s553_s28 = smov 128   ;;  %s554_s29 = smov 8  }
  0x12   :  { %26 = dma.hbm_to_vmem [thread:$0]  %s682_s1, 256, %s21_s19, [#allocation3], %s553_s28, %s553_s28, %s554_s29  }
  0x13   :  { %s555_s7 = smov [#allocation5]   ;;  %s502_s11 = scalar_lea.hbm %s685_s4, 128 }
  0x14   :  { %s37_s8 = sshll.u32 %s555_s7, 4  ;;  %p503_p8 = scmp.ne.s32.totalorder %s685_s4, %s502_s11  ;;  %s38_s8 = int_to_ptr.vmem [resolvable:$true] %s37_s8 }
  0x15   :  { %p506_p9 = scmp.lt.u32.totalorder %s502_s11, %s685_s4 }
  0x17   :  { %p508_p10 = pnand %p506_p9, %p503_p8 }
  0x19   :  { %511 = shalt.err (!%p508_p10)
}
  0x1a   :  { %s512_s16 = scalar_lea.vmem %s38_s8, 128  ;;  %p517_p12 = scmp.lt.s32.totalorder %s38_s8, %s38_s8 }
  0x1b   :  { %p513_p11 = scmp.ne.s32.totalorder %s38_s8, %s512_s16  ;;  %p518_p13 = scmp.lt.s32.totalorder %s512_s16, %s512_s16 }
  0x1d   :  { %p519_p0 = por %p518_p13, %p517_p12 }
  0x1f   :  { %p520_p1 = pnand %p519_p0, %p513_p11 }
  0x21   :  { %523 = shalt.err (!%p520_p1)
}
  0x22   :  { %40 = dma.hbm_to_vmem [thread:$0]  %s685_s4, 128, %s38_s8, [#allocation6]  }
  0x23   :  { %546 = dma.done.wait [#allocation3], 256  }
  0x24   :  { %547 = vsyncadd [#allocation3], 4294967040 }
  0x25   :  { %548 = dma.done.wait [#allocation6], 128  }
  0x26   :  { %549 = vsyncadd [#allocation6], 4294967168  ;;  %v556_v0 = vmov 0.0|0.0   ;;  %vm557_vm0 = vmmov 0   ;;  %v558_v1 = vmov 0.0   ;;  %v53_v2 = vld [vmem:[#allocation2] sm:$0xff] }
  0x27   :  { %447 = vmatprep.subr.bf16.mxu0 %v556_v0  ;;  %422 = vmatprep.mubr.msk.f32.mxu0 %vm557_vm0, %v558_v1  ;;  %v54_v3 = vld [vmem:[#allocation2 + $0x8] sm:$0xff]  ;;  %v621_v5 = vld [vmem:[%s681_s0] sm:$0xff]  ;;  %vm55_vm1 = vcmask 130048   ;;  %v167_v9 = vld [vmem:[%s683_s2 + $0x10] sm:$0xff]  ;;  %vm142_vm3 = vcmask 261120   ;;  %s561_s9 = smov [#allocation7]  }
  0x28   :  { %450 = vmatprep.subr.bf16.mxu1 %v556_v0  ;;  %433 = vmatprep.mubr.msk.f32.mxu1 %vm557_vm0, %v558_v1  ;;  %v448_v4 = vpack.c.bf16 %v54_v3, %v53_v2  ;;  %v165_v6 = vld [vmem:[%s683_s2] sm:$0xff]  ;;  %v166_v7 = vld [vmem:[%s683_s2 + $0x8] sm:$0xff]  ;;  %v168_v10 = vld [vmem:[%s683_s2 + $0x18] sm:$0xff]  ;;  %v146_v24 = vsel %vm55_vm1, %v621_v5, 0.0  ;;  %s559_s2 = smov 96   ;;  %s385_s10 = sshll.u32 %s561_s9, 4  ;;  %s386_s10 = int_to_ptr.vmem [resolvable:$true] %s385_s10 }
  0x29   :  { %v451_v8 = vpack.c.bf16 %v166_v7, %v165_v6  ;;  %v454_v11 = vpack.c.bf16 %v168_v10, %v167_v9  ;;  %v396_v12 = vld [vmem:[#allocation5] ss:$0 sm:$0xff]  ;;  %v285_v35 = vld [vmem:[%s684_s3] sm:$0xff]  ;;  %v286_v36 = vld [vmem:[%s684_s3 + $0x8] sm:$0xff]  ;;  %vm377_vm5 = vcmask 64512   ;;  %s524_s11 = scalar_lea.vmem %s386_s10, 128  ;;  %p529_p3 = scmp.lt.s32.totalorder %s386_s10, %s386_s10 }
  0x2a   :  { %449 = vmatpush3.bf16.msra.mxu0 %v448_v4  ;;  %v287_v37 = vld [vmem:[%s684_s3 + $0x10] sm:$0xff]  ;;  %v457_v38 = vpack.c.bf16 %v286_v36, %v285_v35  ;;  %v288_v39 = vld [vmem:[%s684_s3 + $0x18] sm:$0xff]  ;;  %s560_s3 = smov 64   ;;  %p525_p2 = scmp.ne.s32.totalorder %s386_s10, %s524_s11 }
  0x2b   :  { %456 = vmatprep.subr.bf16.mxu0 %v556_v0  ;;  %452 = vmatpush3.bf16.msra.mxu1 %v451_v8  ;;  %v460_v40 = vpack.c.bf16 %v288_v39, %v287_v37  ;;  %v399_v41 = vld [vmem:[#allocation5 + $0x2] ss:$0 sm:$0xff]  ;;  %v400_v54 = vld [vmem:[#allocation5 + $0x1] ss:$0 sm:$0xff]  ;;  %p530_p4 = scmp.lt.s32.totalorder %s524_s11, %s524_s11 }
  0x2c   :  { %453 = vmatprep.subr.bf16.mxu1 %v556_v0 }
  0x2d   :  { %423 = vmatmul.mubr.msk.f32.vlgmr.msra.gmra.mrb[0].mxu0 %vm55_vm1, %v621_v5  ;;  %p531_p5 = por %p530_p4, %p529_p3 }
  0x2e   :  { %444 = vmatprep.mubr.msk.f32.mxu0 %vm557_vm0, %v558_v1  ;;  %458 = vmatpush3.bf16.msra.mxu0 %v457_v38 }
  0x2f   :  { %455 = vmatpush3.bf16.msra.mxu1 %v454_v11  ;;  %459 = vmatprep.subr.bf16.mxu0 %v556_v0  ;;  %p532_p6 = pnand %p531_p5, %p525_p2 }
  0x32   :  { %461 = vmatpush3.bf16.msra.mxu0 %v460_v40 }
 0x100   :  { %v639_v13 = vpop.f32.mrb[0].mxu0 }
 0x101   :  { %v133_v14 = vadd.f32 %v396_v12, %v639_v13  ;;  %v424_v15 = vpop.f32.mrb[1].mxu0 }
 0x103   :  { %v135_v16 = vmin.f32 %v133_v14, 0.0  ;;  %vm134_vm2 = vcmp.gt.f32.partialorder %v133_v14, 0.0 }
 0x105   :  { %v136_v17 = vmul.f32 1.442695, %v135_v16 }
 0x107   :  { %472 = vpow2.f32 %v136_v17  ;;  %v403_v17 = vld [vmem:[#allocation5 + $0x4] ss:$0 sm:$0xff] }
 0x111   :  { %v473_v18 = vpop.eup %472 }
 0x112   :  { %v397_v19 = vadd.f32 -1.0, %v473_v18 }
 0x114   :  { %v139_v20 = vmul.f32 1.6732632, %v397_v19 }
 0x116   :  { %v140_v21 = vsel %vm134_vm2, %v133_v14, %v139_v20 }
 0x117   :  { %v141_v22 = vmul.f32 1.050701, %v140_v21 }
 0x119   :  { %434 = vmatmul.mubr.msk.f32.vlgmr.msra.gmra.mrb[0].mxu1 %vm142_vm3, %v141_v22  ;;  %v143_v23 = vsel %vm142_vm3, %v141_v22, 0.0 }
 0x11a   :  { %144 = vadd.xlane.f32.xlu0 %v143_v23 }
 0x11e   :  { %147 = vadd.xlane.f32.xlu0 %v146_v24  ;;  %v404_v24 = vld [vmem:[#allocation5 + $0x3] ss:$0 sm:$0xff] }
 0x134   :  { %170 = vrot.lane.b32.xlu0 %v639_v13, %s559_s2 }
 0x1a7   :  { %v145_v25 = vpop.xlane.xlu0 %144 }
 0x1ab   :  { %v148_v26 = vpop.xlane.xlu0 %147 }
 0x1ac   :  { %v149_v27 = vadd.f32 %v148_v26, %v145_v25 }
 0x1ae   :  { %v150_v28 = vmul.f32 0.020833334, %v149_v27 }
 0x1af   :  { %v171_v42 = vpop.permute.xlu0 %170 }
 0x1b0   :  { %v151_v29 = vsub.f32 %v141_v22, %v150_v28  ;;  %v152_v30 = vsub.f32 %v621_v5, %v150_v28  ;;  %v250_v45 = vmul.f32 %v399_v41, %v150_v28 }
 0x1b2   :  { %v153_v31 = vmul.f32 %v151_v29, %v151_v29  ;;  %v157_v33 = vmul.f32 %v152_v30, %v152_v30 }
 0x1b4   :  { %v154_v32 = vsel %vm142_vm3, %v153_v31, 0.0  ;;  %v158_v34 = vsel %vm55_vm1, %v157_v33, 0.0 }
 0x1b5   :  { %155 = vadd.xlane.f32.xlu1 %v154_v32 }
 0x1b9   :  { %159 = vadd.xlane.f32.xlu1 %v158_v34 }
 0x1ec   :  { %v242_v43 = vpop.f32.mrb[0].mxu1 }
 0x1ed   :  { %v243_v44 = vadd.f32 %v242_v43, %v171_v42  ;;  %v435_v46 = vpop.f32.mrb[1].mxu1 }
 0x1ef   :  { %v251_v47 = vsub.f32 %v243_v44, %v250_v45 }
 0x242   :  { %v156_v48 = vpop.xlane.xlu1 %155 }
 0x246   :  { %v160_v49 = vpop.xlane.xlu1 %159 }
 0x247   :  { %v161_v50 = vadd.f32 %v160_v49, %v156_v48 }
 0x249   :  { %v162_v51 = vmul.f32 0.020833334, %v161_v50 }
 0x24b   :  { %v163_v52 = vadd.f32 1e-05, %v162_v51 }
 0x24d   :  { %474 = vrsqrt.f32 %v163_v52 }
 0x257   :  { %v475_v53 = vpop.eup %474 }
 0x258   :  { %v252_v55 = vmul.f32 %v475_v53, %v251_v47 }
 0x25a   :  { %v257_v56 = vadd.f32 %v400_v54, %v252_v55 }
 0x25c   :  { %v259_v57 = vmin.f32 %v257_v56, 0.0  ;;  %vm258_vm4 = vcmp.gt.f32.partialorder %v257_v56, 0.0 }
 0x25e   :  { %v260_v58 = vmul.f32 1.442695, %v259_v57 }
 0x260   :  { %476 = vpow2.f32 %v260_v58 }
 0x26a   :  { %v477_v59 = vpop.eup %476 }
 0x26b   :  { %v401_v60 = vadd.f32 -1.0, %v477_v59 }
 0x26d   :  { %v263_v61 = vmul.f32 1.6732632, %v401_v60 }
 0x26f   :  { %v264_v62 = vsel %vm258_vm4, %v257_v56, %v263_v61 }
 0x270   :  { %v265_v63 = vmul.f32 1.050701, %v264_v62 }
 0x272   :  { %445 = vmatmul.mubr.msk.f32.vlgmr.msra.gmra.mrb[2].mxu0 %vm142_vm3, %v265_v63  ;;  %v266_v0 = vsel %vm142_vm3, %v265_v63, 0.0 }
 0x273   :  { %267 = vadd.xlane.f32.xlu1 %v266_v0 }
 0x300   :  { %v268_v1 = vpop.xlane.xlu1 %267 }
 0x301   :  { %v269_v2 = vadd.f32 %v268_v1, %v148_v26 }
 0x303   :  { %v270_v3 = vmul.f32 0.020833334, %v269_v2 }
 0x305   :  { %v271_v4 = vsub.f32 %v265_v63, %v270_v3  ;;  %v272_v6 = vsub.f32 %v621_v5, %v270_v3  ;;  %v369_v20 = vmul.f32 %v403_v17, %v270_v3 }
 0x307   :  { %v273_v7 = vmul.f32 %v271_v4, %v271_v4  ;;  %v277_v9 = vmul.f32 %v272_v6, %v272_v6 }
 0x309   :  { %v274_v8 = vsel %vm142_vm3, %v273_v7, 0.0  ;;  %v278_v10 = vsel %vm55_vm1, %v277_v9, 0.0 }
 0x30a   :  { %275 = vadd.xlane.f32.xlu1 %v274_v8 }
 0x30e   :  { %279 = vadd.xlane.f32.xlu1 %v278_v10 }
 0x31f   :  { %289 = vrot.lane.b32.xlu1 %v639_v13, %s560_s3 }
 0x345   :  { %v361_v11 = vpop.f32.mrb[2].mxu0 }
 0x346   :  { %v446_v12 = vpop.f32.mrb[3].mxu0 }
 0x397   :  { %v276_v14 = vpop.xlane.xlu1 %275 }
 0x39b   :  { %v280_v15 = vpop.xlane.xlu1 %279 }
 0x39c   :  { %v281_v16 = vadd.f32 %v280_v15, %v276_v14 }
 0x39e   :  { %v282_v18 = vmul.f32 0.020833334, %v281_v16 }
 0x39f   :  { %v290_v19 = vpop.permute.xlu1 %289 }
 0x3a0   :  { %v283_v5 = vadd.f32 1e-05, %v282_v18  ;;  %v362_v21 = vadd.f32 %v361_v11, %v290_v19 }
 0x3a2   :  { %478 = vrsqrt.f32 %v283_v5  ;;  %v370_v22 = vsub.f32 %v362_v21, %v369_v20 }
 0x3ac   :  { %v479_v23 = vpop.eup %478 }
 0x3ad   :  { %v371_v25 = vmul.f32 %v479_v23, %v370_v22 }
 0x3af   :  { %v376_v13 = vadd.f32 %v404_v24, %v371_v25 }
 0x3b1   :  { %378 = vst.msk [vmem:[#allocation7] sm:$0xff] %vm377_vm5, %v376_v13 }
 0x3b2   :  { %535 = shalt.err (!%p532_p6)
}
 0x3b3   :  { %s536_s14 = scalar_lea.hbm %s686_s5, 128 }
 0x3b4   :  { %p537_p7 = scmp.ne.s32.totalorder %s686_s5, %s536_s14  ;;  %p540_p8 = scmp.lt.u32.totalorder %s536_s14, %s686_s5 }
 0x3b6   :  { %p542_p9 = pnand %p540_p8, %p537_p7 }
 0x3b8   :  { %545 = shalt.err (!%p542_p9)
}
 0x3b9   :  { %388 = dma.vmem_to_hbm [thread:$0]  %s386_s10, 128, %s686_s5, [#allocation4]  }
 0x3ba   :  { %550 = dma.done.wait [#allocation4], 128  }
 0x3bb   :  { %551 = vsyncadd [#allocation4], 4294967168 }
 0x3bc   :  { %392 = vsyncpa [#allocation3], 1 }
 0x3bd   :  { %393 = vsyncpa [#allocation6], 1 }
 0x3be   :  { %394 = vsyncpa [#allocation4], 1 }

</bundles_post_ra>
